<compile_context>
chip_gen: v6e
topology: v6e:2x2x1
jax: 0.10.0
libtpu: 0.0.40
codegen_flags: <defaults>
</compile_context>

<pallas_src>
import numpy as np
import jax
import jax.numpy as jnp
from jax.experimental import pallas as pl
from jax.experimental.pallas import tpu as pltpu


_N_PAD = 128                            # lane-dense output width (>= #classes)
_OUT_BYTES = 2                          # bf16 output
_MAX_TILE_M = 2048
_VMEM_BUDGET_BYTES = 12 * 1024 * 1024   # fits v5e default scoped (16 MiB) & v7x


# ---------------------------------------------------------------------------
# Kernels
# ---------------------------------------------------------------------------
def _head_kernel_single(x_ref, w_ref, b_ref, o_ref):
    # x: (M, L_in) f32, w: (L_in, 128) bf16, b: (1, 128) f32, o: (M, 128) bf16
    x_bf = x_ref[...].astype(jnp.bfloat16)          # VPU cast, no HBM copy
    acc = jnp.dot(x_bf, w_ref[...], preferred_element_type=jnp.float32)
    o_ref[...] = (acc + b_ref[...]).astype(o_ref.dtype)


def _head_kernel_tiled(x_ref, w_ref, b_ref, o_ref, acc_ref):
    # x: (tm, tk) f32, w: (tk, 128) bf16, b: (1, 128) f32
    # o: (tm, 128) bf16, acc: (tm, 128) f32 scratch
    k = pl.program_id(1)

    @pl.when(k == 0)
    def _():
        acc_ref[...] = jnp.zeros_like(acc_ref)

    x_bf = x_ref[...].astype(jnp.bfloat16)
    acc_ref[...] += jnp.dot(x_bf, w_ref[...], preferred_element_type=jnp.float32)

    @pl.when(k == pl.num_programs(1) - 1)
    def _():
        o_ref[...] = (acc_ref[...] + b_ref[...]).astype(o_ref.dtype)


# ---------------------------------------------------------------------------
# Host-side (numpy) constant folding of AdaptiveAvgPool1d, done ONCE per head
# ---------------------------------------------------------------------------
def _adaptive_avg_pool1d_matrix_np(l_in: int, l_out: int) -> np.ndarray:
    """Dense P (l_in, l_out) s.t. x @ P == nn.AdaptiveAvgPool1d(l_out)(x)."""
    i = np.arange(l_out)
    starts = (i * l_in) // l_out                    # floor(i * L_in / L_out)
    ends = -((-(i + 1) * l_in) // l_out)            # ceil((i+1) * L_in / L_out)
    j = np.arange(l_in)
    mask = (j[:, None] >= starts[None, :]) & (j[:, None] < ends[None, :])
    counts = (ends - starts).astype(np.float32)
    return mask.astype(np.float32) / counts[None, :]


def _choose_tiles(l_in: int):
    """Pick (tile_m, tk) so one double-buffered grid step fits the VMEM budget."""
    # K (contraction) tile: whole L_in unless very long; then the largest
    # 128-multiple divisor of L_in <= 2048 (fallback: full L_in).
    tk = l_in
    if l_in > 4096:
        for cand in range(2048, 127, -128):
            if l_in % cand == 0:
                tk = cand
                break
    # Row tile from the VMEM budget:
    #   per-row : 2x f32 x slab + 2x bf16 out slab + f32 accumulator
    #   fixed   : 2x bf16 weight slab + 2x f32 bias
    per_row = 2 * (tk * 4 + _N_PAD * _OUT_BYTES) + _N_PAD * 4
    fixed = 2 * (tk * _N_PAD * 2) + 2 * (_N_PAD * 4)
    tile_m = (_VMEM_BUDGET_BYTES - fixed) // per_row
    tile_m = int(max(8, min(_MAX_TILE_M, (tile_m // 8) * 8)))
    return tile_m, tk


# ---------------------------------------------------------------------------
# Fused head: folding/upload once in __init__, pure device work in __call__
# ---------------------------------------------------------------------------
class DinoVits16Head:
    def __init__(self, w_fc, b_fc, l_in, *, tile_m=None, tk=None):
        w_np = np.asarray(jax.device_get(w_fc), dtype=np.float32)   # (4, 768)
        b_np = np.asarray(jax.device_get(b_fc), dtype=np.float32)   # (4,)
        self.n_cls, l_pool = w_np.shape
        self.l_in = int(l_in)

        P = _adaptive_avg_pool1d_matrix_np(self.l_in, l_pool)       # (L_in, 768)
        w_eff = P @ w_np.T                                          # (L_in, 4)
        w_pad = np.zeros((self.l_in, _N_PAD), np.float32)
        w_pad[:, : self.n_cls] = w_eff
        b_pad = np.zeros((1, _N_PAD), np.float32)
        b_pad[0, : self.n_cls] = b_np

        # Device-resident, reused across every call (no per-call H2D / retrace).
        self.w_eff = jnp.asarray(w_pad, dtype=jnp.bfloat16)
        self.b_pad = jnp.asarray(b_pad, dtype=jnp.float32)

        auto_tm, auto_tk = _choose_tiles(self.l_in)
        self.tile_m = int(tile_m) if tile_m is not None else auto_tm
        self.tk = int(tk) if tk is not None else auto_tk
        assert self.tile_m % 8 == 0
        assert self.l_in % self.tk == 0
        assert self.tk == self.l_in or self.tk % 128 == 0

    def __call__(self, x):
        B, C, L_in = x.shape
        assert L_in == self.l_in
        M = B * C
        x2d = x.reshape(M, L_in)          # stays f32; bf16 cast happens in-kernel

        cost = pl.CostEstimate(
            flops=2 * M * L_in * _N_PAD,
            bytes_accessed=(M * L_in * 4 + L_in * _N_PAD * 2
                            + M * _N_PAD * _OUT_BYTES + _N_PAD * 4),
            transcendentals=0,
        )

        if self.tk == L_in and M <= self.tile_m:
            # Whole problem fits one VMEM block: gridless call, no pipeline.
            out_rows = pl.pallas_call(
                _head_kernel_single,
                out_shape=jax.ShapeDtypeStruct((M, _N_PAD), jnp.bfloat16),
                in_specs=[
                    pl.BlockSpec(memory_space=pltpu.MemorySpace.VMEM),
                    pl.BlockSpec(memory_space=pltpu.MemorySpace.VMEM),
                    pl.BlockSpec(memory_space=pltpu.MemorySpace.VMEM),
                ],
                out_specs=pl.BlockSpec(memory_space=pltpu.MemorySpace.VMEM),
                compiler_params=pltpu.CompilerParams(vmem_limit_bytes=32 << 20),
                cost_estimate=cost,
            )(x2d, self.w_eff, self.b_pad)
        else:
            tile_m, tk = self.tile_m, self.tk
            # Tiny sublane pad only (usually a no-op); the ragged last row
            # block is handled by pl.cdiv + Pallas masking -- no pad to tile_m.
            m_p = -(-M // 8) * 8
            if m_p != M:
                x2d = jnp.pad(x2d, ((0, m_p - M), (0, 0)))
            grid = (pl.cdiv(m_p, tile_m), L_in // tk)
            out_rows = pl.pallas_call(
                _head_kernel_tiled,
                out_shape=jax.ShapeDtypeStruct((m_p, _N_PAD), jnp.bfloat16),
                grid_spec=pltpu.PrefetchScalarGridSpec(
                    num_scalar_prefetch=0,
                    grid=grid,
                    in_specs=[
                        pl.BlockSpec((tile_m, tk), lambda i, k: (i, k)),
                        pl.BlockSpec((tk, _N_PAD), lambda i, k: (k, 0)),
                        pl.BlockSpec((1, _N_PAD), lambda i, k: (0, 0)),
                    ],
                    out_specs=pl.BlockSpec((tile_m, _N_PAD), lambda i, k: (i, 0)),
                    scratch_shapes=[pltpu.VMEM((tile_m, _N_PAD), jnp.float32)],
                ),
                compiler_params=pltpu.CompilerParams(
                    dimension_semantics=("parallel", "arbitrary"),
                    vmem_limit_bytes=32 << 20,
                ),
                cost_estimate=cost,
            )(x2d, self.w_eff, self.b_pad)

        return (out_rows[:M, : self.n_cls]
                .astype(jnp.float32)
                .reshape(B, C, self.n_cls))


if __name__ == "__main__":
    key = jax.random.PRNGKey(0)
    k_x, k_w, k_b, k_x2 = jax.random.split(key, 4)

    L_IN, L_POOL, N_CLS = 384, 768, 4
    bound = float(1.0 / np.sqrt(L_POOL))
    w_fc = jax.random.uniform(k_w, (N_CLS, L_POOL), jnp.float32, -bound, bound)
    b_fc = jax.random.uniform(k_b, (N_CLS,), jnp.float32, -bound, bound)

    # Pure-JAX f32 reference of the exact module math (pool-as-matmul + linear).
    P_ref = jnp.asarray(_adaptive_avg_pool1d_matrix_np(L_IN, L_POOL))

    def ref_forward(xx):
        return jnp.einsum("bcl,lo->bco", xx, P_ref) @ w_fc.T + b_fc

    # --- Test 1: small shape -> single-block (gridless) path -----------------
    B, C = 2, 4
    x = jax.random.normal(k_x, (B, C, L_IN), dtype=jnp.float32)
    head = DinoVits16Head(w_fc, b_fc, L_IN)            # folding + upload ONCE
    out = head(x)
    jax.block_until_ready(out)
    assert out.shape == (B, C, N_CLS)
    ref = ref_forward(x)
    # Tolerance accounts for bf16 MXU inputs / bf16 output (f32 accumulate).
    assert jnp.allclose(out, ref, atol=3e-2, rtol=3e-2), float(
        jnp.max(jnp.abs(out - ref)))

    # --- Test 2: exercise the tiled (rows x K grid) path with ragged rows ----
    B2, C2 = 2, 257                                    # M = 514 (not 8-aligned)
    x2 = jax.random.normal(k_x2, (B2, C2, L_IN), dtype=jnp.float32)
    head_tiled = DinoVits16Head(w_fc, b_fc, L_IN, tile_m=128, tk=128)
    out2 = head_tiled(x2)
    jax.block_until_ready(out2)
    assert out2.shape == (B2, C2, N_CLS)
    ref2 = ref_forward(x2)
    assert jnp.allclose(out2, ref2, atol=3e-2, rtol=3e-2), float(
        jnp.max(jnp.abs(out2 - ref2)))

    print("KERNEL_OK")
</pallas_src>

<mosaic_0001>
module attributes {stable_mosaic.version = 11 : i64} {
  func.func @_head_kernel_single(%arg0: memref<8x384xf32, #tpu.memory_space<vmem>>, %arg1: memref<384x128xbf16, #tpu.memory_space<vmem>>, %arg2: memref<1x128xf32, #tpu.memory_space<vmem>>, %arg3: memref<8x128xbf16, #tpu.memory_space<vmem>>) attributes {dimension_semantics = [], scalar_prefetch = 0 : i64, scratch_operands = 0 : i64, tpu.core_type = #tpu.core_type<tc>} {
    %c0 = arith.constant 0 : index
    %c0_0 = arith.constant 0 : index
    %0 = vector.load %arg0[%c0, %c0_0] : memref<8x384xf32, #tpu.memory_space<vmem>>, vector<8x384xf32>
    %1 = arith.truncf %0 : vector<8x384xf32> to vector<8x384xbf16>
    %c0_1 = arith.constant 0 : index
    %c0_2 = arith.constant 0 : index
    %2 = vector.load %arg1[%c0_1, %c0_2] : memref<384x128xbf16, #tpu.memory_space<vmem>>, vector<384x128xbf16>
    %cst = arith.constant dense<0.000000e+00> : vector<8x128xf32>
    %3 = tpu.matmul %1, %2, %cst {dimension_numbers = #tpu.dot_dimension_numbers<[1], [0], [0], [1], [0, 0, 1, 1], [], []>} : vector<8x384xbf16>, vector<384x128xbf16>, vector<8x128xf32> -> vector<8x128xf32>
    %c0_3 = arith.constant 0 : index
    %c0_4 = arith.constant 0 : index
    %4 = vector.load %arg2[%c0_3, %c0_4] : memref<1x128xf32, #tpu.memory_space<vmem>>, vector<1x128xf32>
    %5 = vector.broadcast %4 : vector<1x128xf32> to vector<8x128xf32>
    %6 = arith.addf %3, %5 : vector<8x128xf32>
    %7 = arith.truncf %6 : vector<8x128xf32> to vector<8x128xbf16>
    %c0_5 = arith.constant 0 : index
    %c0_6 = arith.constant 0 : index
    %8 = vector.load %arg3[%c0_5, %c0_6] : memref<8x128xbf16, #tpu.memory_space<vmem>>, vector<8x128xbf16>
    tpu.vector_store %arg3[%c0_5, %c0_6], %7 {strides = array<i32>} : memref<8x128xbf16, #tpu.memory_space<vmem>>, vector<8x128xbf16>,
    return
  }
}

</mosaic_0001>

<bundles_post_ra>
// kernel: tpu_custom_call.1
= control target key start
LH: loop header
LB: loop body
LE: loop exit
PB: predicated region body
PF: predicated region fallthrough
CT: control target
= control target key end

     0   :  { %8 = vsyncpa [#allocation3], 0  ;;  %s557_s0 = inlined_call_operand.hbm [shape: f32[8,384], index: 0, kind: input, shape index: {}]   ;;  %s558_s1 = inlined_call_operand.hbm [shape: bf16[384,128], index: 1, kind: input, shape index: {}]   ;;  %s559_s2 = inlined_call_operand.vmem [shape: f32[1,128], index: 2, kind: input, shape index: {}]   ;;  %s560_s3 = inlined_call_operand.hbm [shape: bf16[8,128], index: 3, kind: output, shape index: {}]  }
   0x1   :  { %9 = vsyncpa [#allocation6], 0 }
   0x2   :  { %10 = vsyncpa [#allocation4], 0  ;;  %s518_s12 = smov [#allocation2]   ;;  %s519_s14 = smov [#allocation5]  }
   0x3   :  { %s17_s13 = sshll.u32 %s518_s12, 4  ;;  %s26_s15 = sshll.u32 %s519_s14, 4  ;;  %s18_s13 = int_to_ptr.vmem [resolvable:$true] %s17_s13  ;;  %s27_s15 = int_to_ptr.vmem [resolvable:$true] %s26_s15 }
   0x4   :  { %s460_s16 = scalar_lea.vmem %s18_s13, 384  ;;  %p465_p1 = scmp.lt.s32.totalorder %s18_s13, %s18_s13 }
   0x5   :  { %p461_p0 = scmp.ne.s32.totalorder %s18_s13, %s460_s16  ;;  %p466_p2 = scmp.lt.s32.totalorder %s460_s16, %s460_s16 }
   0x7   :  { %p467_p3 = por %p466_p2, %p465_p1 }
   0x9   :  { %p468_p4 = pnand %p467_p3, %p461_p0 }
   0xb   :  { %471 = shalt.err (!%p468_p4)
}
   0xc   :  { %20 = dma.hbm_to_vmem [thread:$0]  %s557_s0, 384, %s18_s13, [#allocation3]  }
   0xd   :  { %s480_s19 = scalar_lea.vmem %s27_s15, 3072  ;;  %p485_p6 = scmp.lt.s32.totalorder %s27_s15, %s27_s15 }
   0xe   :  { %p481_p5 = scmp.ne.s32.totalorder %s27_s15, %s480_s19  ;;  %p486_p7 = scmp.lt.s32.totalorder %s480_s19, %s480_s19 }
  0x10   :  { %p487_p8 = por %p486_p7, %p485_p6 }
  0x12   :  { %p488_p9 = pnand %p487_p8, %p481_p5 }
  0x14   :  { %491 = shalt.err (!%p488_p9)
}
  0x15   :  { %s520_s20 = smov 64   ;;  %s521_s21 = smov 4  }
  0x16   :  { %32 = dma.hbm_to_vmem [thread:$0]  %s558_s1, 3072, %s27_s15, [#allocation6], %s520_s20, %s520_s20, %s521_s21  }
  0x17   :  { %512 = dma.done.wait [#allocation3], 384  }
  0x18   :  { %513 = vsyncadd [#allocation3], 4294966912 }
  0x19   :  { %514 = dma.done.wait [#allocation6], 3072  }
  0x1a   :  { %515 = vsyncadd [#allocation6], 4294964224  ;;  %v522_v0 = vmov 0.0   ;;  %vm523_vm0 = vmmov 0   ;;  %v428_v1 = vld [vmem:[#allocation5 + $0x78] sm:$0xff]   ;;  %v431_v4 = vld [vmem:[#allocation5 + $0x70] sm:$0xff]  }
  0x1b   :  { %401 = vmatprep.subr.bf16.mxu1 %v522_v0  ;;  %417 = vmatprep.mubr.msk.bf16.mxu1 %vm523_vm0, %v522_v0  ;;  %v429_v2 = vld [vmem:[#allocation5 + $0x38] sm:$0xff]   ;;  %v432_v5 = vld [vmem:[#allocation5 + $0x30] sm:$0xff]   ;;  %v434_v7 = vld [vmem:[#allocation5 + $0x68] sm:$0xff]   ;;  %s524_s24 = smov [#allocation7]  }
  0x1c   :  { %370 = vmatprep.subr.bf16.mxu0 %v428_v1  ;;  %v430_v3 = vld [vmem:[#allocation5 + $0xb8] sm:$0xff]   ;;  %v433_v6 = vld [vmem:[#allocation5 + $0xb0] sm:$0xff]   ;;  %v435_v8 = vld [vmem:[#allocation5 + $0x28] sm:$0xff]   ;;  %s335_s25 = sshll.u32 %s524_s24, 4  ;;  %s336_s25 = int_to_ptr.vmem [resolvable:$true] %s335_s25 }
  0x1d   :  { %371 = vmatpush3.bf16.msra.mxu0 %v429_v2  ;;  %402 = vmatpush3.bf16.msra.mxu1 %v430_v3  ;;  %v436_v9 = vld [vmem:[#allocation5 + $0xa8] sm:$0xff]   ;;  %v437_v10 = vld [vmem:[#allocation5 + $0x60] sm:$0xff]   ;;  %v440_v13 = vld [vmem:[#allocation5 + $0x58] sm:$0xff]   ;;  %s492_s26 = scalar_lea.vmem %s336_s25, 64  ;;  %p497_p11 = scmp.lt.s32.totalorder %s336_s25, %s336_s25 }
  0x1e   :  { %372 = vmatprep.subr.bf16.mxu0 %v431_v4  ;;  %403 = vmatprep.subr.bf16.mxu1 %v522_v0  ;;  %v438_v11 = vld [vmem:[#allocation5 + $0x20] sm:$0xff]   ;;  %v441_v14 = vld [vmem:[#allocation5 + $0x18] sm:$0xff]   ;;  %v443_v16 = vld [vmem:[#allocation5 + $0x50] sm:$0xff]   ;;  %p493_p10 = scmp.ne.s32.totalorder %s336_s25, %s492_s26  ;;  %p498_p12 = scmp.lt.s32.totalorder %s492_s26, %s492_s26 }
  0x1f   :  { %v439_v12 = vld [vmem:[#allocation5 + $0xa0] sm:$0xff]   ;;  %v442_v15 = vld [vmem:[#allocation5 + $0x98] sm:$0xff]   ;;  %v444_v17 = vld [vmem:[#allocation5 + $0x10] sm:$0xff]  }
  0x20   :  { %v445_v18 = vld [vmem:[#allocation5 + $0x90] sm:$0xff]   ;;  %v446_v19 = vld [vmem:[#allocation5 + $0x48] sm:$0xff]   ;;  %v449_v22 = vld [vmem:[#allocation5 + $0x40] sm:$0xff]   ;;  %p499_p13 = por %p498_p12, %p497_p11 }
  0x21   :  { %373 = vmatpush3.bf16.msra.mxu0 %v432_v5  ;;  %404 = vmatpush3.bf16.msra.mxu1 %v433_v6  ;;  %v447_v20 = vld [vmem:[#allocation5 + $0x8] sm:$0xff]   ;;  %v43_v23 = vld [vmem:[#allocation2 + $0x8] sm:$0xff]  ;;  %v450_v25 = vld [vmem:[#allocation5] sm:$0xff]  }
  0x22   :  { %374 = vmatprep.subr.bf16.mxu0 %v434_v7  ;;  %405 = vmatprep.subr.bf16.mxu1 %v522_v0  ;;  %v448_v21 = vld [vmem:[#allocation5 + $0x88] sm:$0xff]   ;;  %v46_v24 = vpack.c.bf16 %v43_v23, %v43_v23  ;;  %v451_v27 = vld [vmem:[#allocation5 + $0x80] sm:$0xff]   ;;  %v44_v28 = vld [vmem:[#allocation2 + $0x10] sm:$0xff]  ;;  %p500_p0 = pnand %p499_p13, %p493_p10 }
  0x23   :  { %v42_v26 = vld [vmem:[#allocation2] sm:$0xff]  ;;  %v47_v30 = vpack.c.bf16 %v44_v28, %v44_v28 }
  0x24   :  { %279 = vmatprep.mubr.bf16.mxu0 %v46_v24  ;;  %v45_v29 = vpack.c.bf16 %v42_v26, %v42_v26  ;;  %v345_v33 = vld [vmem:[%s559_s2] ss:$0 sm:$0xff] }
  0x25   :  { %375 = vmatpush3.bf16.msra.mxu0 %v435_v8  ;;  %406 = vmatpush3.bf16.msra.mxu1 %v436_v9 }
  0x26   :  { %376 = vmatprep.subr.bf16.mxu0 %v437_v10  ;;  %407 = vmatprep.subr.bf16.mxu1 %v522_v0 }
  0x29   :  { %377 = vmatpush3.bf16.msra.mxu0 %v438_v11  ;;  %408 = vmatpush3.bf16.msra.mxu1 %v439_v12 }
  0x2a   :  { %378 = vmatprep.subr.bf16.mxu0 %v440_v13  ;;  %409 = vmatprep.subr.bf16.mxu1 %v522_v0 }
  0x2d   :  { %379 = vmatpush3.bf16.msra.mxu0 %v441_v14  ;;  %410 = vmatpush3.bf16.msra.mxu1 %v442_v15 }
  0x2e   :  { %380 = vmatprep.subr.bf16.mxu0 %v443_v16  ;;  %411 = vmatprep.subr.bf16.mxu1 %v522_v0 }
  0x31   :  { %381 = vmatpush3.bf16.msra.mxu0 %v444_v17  ;;  %412 = vmatpush3.bf16.msra.mxu1 %v445_v18 }
  0x32   :  { %382 = vmatprep.subr.bf16.mxu0 %v446_v19  ;;  %413 = vmatprep.subr.bf16.mxu1 %v522_v0 }
  0x35   :  { %383 = vmatpush3.bf16.msra.mxu0 %v447_v20  ;;  %414 = vmatpush3.bf16.msra.mxu1 %v448_v21 }
  0x36   :  { %384 = vmatprep.subr.bf16.mxu0 %v449_v22  ;;  %415 = vmatprep.subr.bf16.mxu1 %v522_v0 }
  0x39   :  { %385 = vmatpush3.bf16.msra.mxu0 %v450_v25  ;;  %416 = vmatpush3.bf16.msra.mxu1 %v451_v27 }
  0x3c   :  { %280 = vmatmul.mubr.bf16.vlgmr.msra.gmra.mxu0 %v45_v29  ;;  %418 = vmatmul.mubr.bf16.vlgmr.msra.gmra.mxu1 %v47_v30 }
  0xfc   :  { %v386_v31 = vpop.f32.mrf.mxu0  ;;  %v321_v32 = vpop.f32.mrf.mxu1 }
  0xfe   :  { %v387_v34 = vpop.f32.mrf.mxu0  ;;  %v419_v36 = vpop.f32.mrf.mxu1 }
  0xff   :  { %v388_v35 = vadd.f32 %v387_v34, %v386_v31 }
 0x100   :  { %v389_v37 = vpop.f32.mrf.mxu0  ;;  %v324_v39 = vpop.f32.mrf.mxu1 }
 0x101   :  { %v282_v38 = vadd.f32 %v388_v35, %v345_v33 }
 0x102   :  { %v390_v40 = vpop.f32.mrf.mxu0  ;;  %v420_v41 = vpop.f32.mrf.mxu1 }
 0x103   :  { %v322_v42 = vadd.f32 %v321_v32, %v282_v38 }
 0x105   :  { %v327_v43 = vpack.c.bf16 %v322_v42, %v322_v42 }
 0x107   :  { %328 = vst [vmem:[#allocation7] sm:$0xf] %v327_v43 }
 0x108   :  { %503 = shalt.err (!%p500_p0)
}
 0x109   :  { %338 = dma.vmem_to_hbm [thread:$0]  %s336_s25, 64, %s560_s3, [#allocation4]  }
 0x10a   :  { %516 = dma.done.wait [#allocation4], 64  }
 0x10b   :  { %517 = vsyncadd [#allocation4], 4294967232 }
 0x10c   :  { %342 = vsyncpa [#allocation3], 1 }
 0x10d   :  { %343 = vsyncpa [#allocation6], 1 }
 0x10e   :  { %344 = vsyncpa [#allocation4], 1 }

</bundles_post_ra>
